<compile_context>
chip_gen: v6e
topology: v6e:2x2x1
jax: 0.10.0
libtpu: 0.0.40
codegen_flags: <defaults>
</compile_context>

<pallas_src>
import functools

import jax
import jax.numpy as jnp
from jax.experimental import pallas as pl
from jax.experimental.pallas import tpu as pltpu

_LANES = 128
_SUBLANES = 8


def _round_up(n, m):
    return ((n + m - 1) // m) * m


def wnet_kernel(xT_ref, w1T_ref, b1T_ref, w2T_ref, b2T_ref, o_ref):
    # h^T = relu(W1^T @ x^T + b1^T)   shape (h_pad, tb), f32 accumulate on MXU.
    hT = jnp.dot(w1T_ref[...], xT_ref[...], preferred_element_type=jnp.float32)
    hT = jnp.maximum(hT + b1T_ref[...], 0.0)        # b1T is (h_pad, 1) -> lane broadcast
    # y^T = W2^T @ h^T + b2^T         shape (o_pad, tb).
    yT = jnp.dot(w2T_ref[...], hT.astype(w2T_ref.dtype),
                 preferred_element_type=jnp.float32)
    yT = yT + b2T_ref[...]                          # b2T is (o_pad, 1)
    # jax.nn.sigmoid lowers to the EUP logistic path (no VALU divide).
    o_ref[...] = jax.nn.sigmoid(yT).astype(o_ref.dtype)


@functools.partial(
    jax.jit, static_argnames=("block_batch", "param_dtype", "core_parallel"))
def wnet_forward(x, w1, b1, w2, b2, *, block_batch=32768,
                 param_dtype=jnp.bfloat16, core_parallel=False):
    """x: (B, input_dim); w1: (input_dim, hidden); b1: (hidden,) or (1, hidden);
    w2: (hidden, output_dim); b2: (output_dim,) or (1, output_dim).
    Returns (B, output_dim) float32."""
    B, in_dim = x.shape
    hidden = w1.shape[1]
    out_dim = w2.shape[1]

    # Feature dims only need sublane (8) alignment in the feature-major layout.
    in_pad = _round_up(in_dim, _SUBLANES)
    h_pad = _round_up(hidden, _SUBLANES)
    o_pad = _round_up(out_dim, _SUBLANES)

    # Batch tile is the lane dim -> must be a multiple of 128.
    tb = min(block_batch, _round_up(B, _LANES))
    tb = max(_LANES, (tb // _LANES) * _LANES)
    b_padded = _round_up(B, tb)

    # Single fused pad+transpose+cast pass (the transpose is needed anyway for
    # the feature-major layout; zero padding is exact: padded input/hidden rows
    # multiply zero weight rows/columns).
    xT = jnp.zeros((in_pad, b_padded), param_dtype).at[:in_dim, :B].set(
        x.T.astype(param_dtype))
    w1T = jnp.zeros((h_pad, in_pad), param_dtype).at[:hidden, :in_dim].set(
        w1.T.astype(param_dtype))
    w2T = jnp.zeros((o_pad, h_pad), param_dtype).at[:out_dim, :hidden].set(
        w2.T.astype(param_dtype))
    # Biases stay f32: epilogue math is always f32 (v5e has no bf16 VPU/EUP).
    b1T = jnp.zeros((h_pad, 1), jnp.float32).at[:hidden, 0].set(
        b1.reshape(-1).astype(jnp.float32))
    b2T = jnp.zeros((o_pad, 1), jnp.float32).at[:out_dim, 0].set(
        b2.reshape(-1).astype(jnp.float32))

    sem = (pltpu.CORE_PARALLEL,) if core_parallel else ("parallel",)
    grid = (b_padded // tb,)

    outT = pl.pallas_call(
        wnet_kernel,
        out_shape=jax.ShapeDtypeStruct((o_pad, b_padded), jnp.float32),
        grid=grid,
        in_specs=[
            # x^T: pipelined over the batch (lane) grid, lane-dense DMA.
            pl.BlockSpec((in_pad, tb), lambda i: (0, i)),
            # Weights / biases: full blocks, constant index -> VMEM-resident.
            pl.BlockSpec((h_pad, in_pad), lambda i: (0, 0)),
            pl.BlockSpec((h_pad, 1), lambda i: (0, 0)),
            pl.BlockSpec((o_pad, h_pad), lambda i: (0, 0)),
            pl.BlockSpec((o_pad, 1), lambda i: (0, 0)),
        ],
        out_specs=pl.BlockSpec((o_pad, tb), lambda i: (0, i)),
        compiler_params=pltpu.CompilerParams(
            dimension_semantics=sem,
            vmem_limit_bytes=32 * 1024 * 1024),
    )(xT, w1T, b1T, w2T, b2T)

    # Padded output rows contain sigmoid(0) = 0.5 -> sliced away here; never
    # consume outT directly.
    return outT[:out_dim, :B].T


def reference_forward(x, w1, b1, w2, b2):
    h = jnp.maximum(x @ w1 + b1.reshape(1, -1), 0.0)
    return jax.nn.sigmoid(h @ w2 + b2.reshape(1, -1))


if __name__ == "__main__":
    # Shapes consistent with the module's forward:
    #   loss: (batch, input_dim) -> weight: (batch, output_dim)
    batch, input_dim, hidden_dim, output_dim = 8, 4, 32, 2

    key = jax.random.PRNGKey(0)
    k_x, k_w1, k_b1, k_w2, k_b2, k_x2 = jax.random.split(key, 6)

    x = jax.random.normal(k_x, (batch, input_dim), dtype=jnp.float32)
    # Deterministic parameter init (synthetic; not loading a checkpoint).
    w1 = jax.random.normal(k_w1, (input_dim, hidden_dim), dtype=jnp.float32) * 0.1
    b1 = jax.random.normal(k_b1, (1, hidden_dim), dtype=jnp.float32) * 0.1
    w2 = jax.random.normal(k_w2, (hidden_dim, output_dim), dtype=jnp.float32) * 0.1
    b2 = jax.random.normal(k_b2, (1, output_dim), dtype=jnp.float32) * 0.1

    ref = reference_forward(x, w1, b1, w2, b2)

    # Exact f32 path (single tile, batch=8).
    out_f32 = wnet_forward(x, w1, b1, w2, b2, param_dtype=jnp.float32)
    jax.block_until_ready(out_f32)
    assert out_f32.shape == (batch, output_dim)
    assert jnp.allclose(out_f32, ref, atol=1e-5, rtol=1e-5)

    # Default bf16-matmul / f32-epilogue path (looser tolerance is expected).
    out_bf16 = wnet_forward(x, w1, b1, w2, b2)
    jax.block_until_ready(out_bf16)
    assert out_bf16.shape == (batch, output_dim)
    assert jnp.allclose(out_bf16, ref, atol=2e-2, rtol=2e-2)

    # Ragged multi-tile batch to exercise the grid + padding path.
    big_b = 300
    x2 = jax.random.normal(k_x2, (big_b, input_dim), dtype=jnp.float32)
    out2 = wnet_forward(x2, w1, b1, w2, b2, block_batch=128,
                        param_dtype=jnp.float32)
    jax.block_until_ready(out2)
    ref2 = reference_forward(x2, w1, b1, w2, b2)
    assert out2.shape == (big_b, output_dim)
    assert jnp.allclose(out2, ref2, atol=1e-5, rtol=1e-5)

    print("KERNEL_OK")
</pallas_src>

<mosaic_0001>
module attributes {stable_mosaic.version = 11 : i64} {
  func.func @wnet_kernel(%arg0: i32, %arg1: memref<8x128xf32, #tpu.memory_space<vmem>>, %arg2: memref<32x8xf32, #tpu.memory_space<vmem>>, %arg3: memref<32x1xf32, #tpu.memory_space<vmem>>, %arg4: memref<8x32xf32, #tpu.memory_space<vmem>>, %arg5: memref<8x1xf32, #tpu.memory_space<vmem>>, %arg6: memref<8x128xf32, #tpu.memory_space<vmem>>) attributes {dimension_semantics = [#tpu.dimension_semantics<parallel>], iteration_bounds = array<i64: 1>, scalar_prefetch = 0 : i64, scratch_operands = 0 : i64, tpu.core_type = #tpu.core_type<tc>, window_params = [{transform_indices = @transform_0, window_bounds = array<i64: 8, 128>}, {pipeline_mode = #tpu.pipeline_mode<synchronous>, transform_indices = @transform_1, window_bounds = array<i64: 32, 8>}, {pipeline_mode = #tpu.pipeline_mode<synchronous>, transform_indices = @transform_2, window_bounds = array<i64: 32, 1>}, {pipeline_mode = #tpu.pipeline_mode<synchronous>, transform_indices = @transform_3, window_bounds = array<i64: 8, 32>}, {pipeline_mode = #tpu.pipeline_mode<synchronous>, transform_indices = @transform_4, window_bounds = array<i64: 8, 1>}, {transform_indices = @transform_5, window_bounds = array<i64: 8, 128>}]} {
    %c0 = arith.constant 0 : index
    %c0_0 = arith.constant 0 : index
    %0 = vector.load %arg2[%c0, %c0_0] : memref<32x8xf32, #tpu.memory_space<vmem>>, vector<32x8xf32>
    %c0_1 = arith.constant 0 : index
    %c0_2 = arith.constant 0 : index
    %1 = vector.load %arg1[%c0_1, %c0_2] : memref<8x128xf32, #tpu.memory_space<vmem>>, vector<8x128xf32>
    %cst = arith.constant dense<0.000000e+00> : vector<32x128xf32>
    %2 = tpu.matmul %0, %1, %cst {dimension_numbers = #tpu.dot_dimension_numbers<[1], [0], [0], [1], [0, 0, 1, 1], [], []>} : vector<32x8xf32>, vector<8x128xf32>, vector<32x128xf32> -> vector<32x128xf32>
    %c0_3 = arith.constant 0 : index
    %c0_4 = arith.constant 0 : index
    %3 = vector.load %arg3[%c0_3, %c0_4] : memref<32x1xf32, #tpu.memory_space<vmem>>, vector<32x1xf32>
    %4 = vector.broadcast %3 : vector<32x1xf32> to vector<32x128xf32>
    %5 = arith.addf %2, %4 : vector<32x128xf32>
    %cst_5 = arith.constant 0.000000e+00 : f32
    %6 = vector.broadcast %cst_5 : f32 to vector<32x128xf32>
    %7 = arith.maximumf %5, %6 : vector<32x128xf32>
    %c0_6 = arith.constant 0 : index
    %c0_7 = arith.constant 0 : index
    %8 = vector.load %arg4[%c0_6, %c0_7] : memref<8x32xf32, #tpu.memory_space<vmem>>, vector<8x32xf32>
    %cst_8 = arith.constant dense<0.000000e+00> : vector<8x128xf32>
    %9 = tpu.matmul %8, %7, %cst_8 {dimension_numbers = #tpu.dot_dimension_numbers<[1], [0], [0], [1], [0, 0, 1, 1], [], []>} : vector<8x32xf32>, vector<32x128xf32>, vector<8x128xf32> -> vector<8x128xf32>
    %c0_9 = arith.constant 0 : index
    %c0_10 = arith.constant 0 : index
    %10 = vector.load %arg5[%c0_9, %c0_10] : memref<8x1xf32, #tpu.memory_space<vmem>>, vector<8x1xf32>
    %11 = vector.broadcast %10 : vector<8x1xf32> to vector<8x128xf32>
    %12 = arith.addf %9, %11 : vector<8x128xf32>
    %13 = arith.negf %12 : vector<8x128xf32>
    %14 = math.exp %13 : vector<8x128xf32>
    %cst_11 = arith.constant 1.000000e+00 : f32
    %15 = vector.broadcast %cst_11 : f32 to vector<8x128xf32>
    %16 = arith.addf %15, %14 : vector<8x128xf32>
    %17 = arith.divf %15, %16 : vector<8x128xf32>
    %c0_12 = arith.constant 0 : index
    %c0_13 = arith.constant 0 : index
    %18 = vector.load %arg6[%c0_12, %c0_13] : memref<8x128xf32, #tpu.memory_space<vmem>>, vector<8x128xf32>
    tpu.vector_store %arg6[%c0_12, %c0_13], %17 {strides = array<i32>} : memref<8x128xf32, #tpu.memory_space<vmem>>, vector<8x128xf32>,
    return
  }
  func.func @transform_0(%arg0: i32) -> (i32, i32) {
    %c0_i32 = arith.constant 0 : i32
    %c0_i32_0 = arith.constant 0 : i32
    return %c0_i32, %arg0 : i32, i32
  }
  func.func @transform_1(%arg0: i32) -> (i32, i32) {
    %c0_i32 = arith.constant 0 : i32
    %c0_i32_0 = arith.constant 0 : i32
    %c0_i32_1 = arith.constant 0 : i32
    return %c0_i32, %c0_i32_0 : i32, i32
  }
  func.func @transform_2(%arg0: i32) -> (i32, i32) {
    %c0_i32 = arith.constant 0 : i32
    %c0_i32_0 = arith.constant 0 : i32
    %c0_i32_1 = arith.constant 0 : i32
    return %c0_i32, %c0_i32_0 : i32, i32
  }
  func.func @transform_3(%arg0: i32) -> (i32, i32) {
    %c0_i32 = arith.constant 0 : i32
    %c0_i32_0 = arith.constant 0 : i32
    %c0_i32_1 = arith.constant 0 : i32
    return %c0_i32, %c0_i32_0 : i32, i32
  }
  func.func @transform_4(%arg0: i32) -> (i32, i32) {
    %c0_i32 = arith.constant 0 : i32
    %c0_i32_0 = arith.constant 0 : i32
    %c0_i32_1 = arith.constant 0 : i32
    return %c0_i32, %c0_i32_0 : i32, i32
  }
  func.func @transform_5(%arg0: i32) -> (i32, i32) {
    %c0_i32 = arith.constant 0 : i32
    %c0_i32_0 = arith.constant 0 : i32
    return %c0_i32, %arg0 : i32, i32
  }
}

</mosaic_0001>

<bundles_post_ra>
// kernel: wnet_forward.1
= control target key start
LH: loop header
LB: loop body
LE: loop exit
PB: predicated region body
PF: predicated region fallthrough
CT: control target
= control target key end

     0   :  { %vm49_vm0 = vcmask 64512   ;;  %v287_v3 = vmov 0   ;;  %v288_v11 = vmov 0.0   ;;  %vm289_vm1 = vmmov 0   ;;  %s360_s0 = inlined_call_operand.vmem [shape: f32[8,128], index: 0, kind: input, shape index: {}]   ;;  %s361_s1 = inlined_call_operand.vmem [shape: f32[32,8], index: 1, kind: input, shape index: {}]   ;;  %s362_s2 = inlined_call_operand.vmem [shape: f32[32,1], index: 2, kind: input, shape index: {}]   ;;  %s363_s4 = inlined_call_operand.vmem [shape: f32[8,1], index: 4, kind: input, shape index: {}]   ;;  %s364_s3 = inlined_call_operand.vmem [shape: f32[8,32], index: 3, kind: input, shape index: {}]   ;;  %s365_s5 = inlined_call_operand.vmem [shape: f32[8,128], index: 5, kind: output, shape index: {}]  }
   0x1   :  { %v24_v0 = vld [vmem:[%s360_s0] sm:$0xff]  ;;  %v21_v2 = vld [vmem:[%s361_s1 + $0x8] sm:$0xff]  ;;  %281 = vset.pattern.permute.xlu0 %v287_v3  ;;  %282 = vset.pattern.permute.xlu1 %v287_v3  ;;  %v22_v4 = vld [vmem:[%s361_s1 + $0x10] sm:$0xff]  ;;  %vm158_vm2 = vcmask 261120  }
   0x2   :  { %v20_v1 = vld [vmem:[%s361_s1] sm:$0xff]  ;;  %259 = vmatprep.subr.mxu0 %v24_v0  ;;  %v28_v5 = vld [vmem:[%s362_s2 + $0x18] sm:$0xff]  ;;  %v26_v6 = vld [vmem:[%s362_s2 + $0x8] sm:$0xff]  ;;  %267 = vmatprep.subr.mxu1 %v288_v11 }
   0x3   :  { %261 = vmatprep.mubr.msk.f32.mxu0 %vm49_vm0, %v20_v1  ;;  %260 = vmatpush3.msra.mxu0 %v24_v0  ;;  %v27_v7 = vld [vmem:[%s362_s2 + $0x10] sm:$0xff]  ;;  %v23_v8 = vld [vmem:[%s361_s1 + $0x18] sm:$0xff]  ;;  %v25_v9 = vld [vmem:[%s362_s2] sm:$0xff] }
   0x4   :  { %46 = vperm.xlu0 %281, %v28_v5   ;;  %262 = vmatmul.mubr.msk.f32.vlgmr.msra.gmra.mxu0 %vm49_vm0, %v21_v2  ;;  %v152_v10 = vld [vmem:[%s363_s4] sm:$0xff] }
   0x5   :  { %36 = vperm.xlu1 %282, %v26_v6   ;;  %264 = vmatprep.mubr.msk.f32.mxu0 %vm49_vm0, %v22_v4  ;;  %v151_v28 = vld [vmem:[%s364_s3] sm:$0xff] }
   0x6   :  { %275 = vmatprep.mubr.msk.f32.mxu1 %vm289_vm1, %v288_v11 }
   0x8   :  { %41 = vperm.xlu0 %281, %v27_v7   ;;  %265 = vmatmul.mubr.msk.f32.gmra.mxu0 %vm49_vm0, %v23_v8 }
   0x9   :  { %31 = vperm.xlu1 %282, %v25_v9  }
   0xc   :  { %155 = vperm.xlu0 %281, %v152_v10  }
  0x7f   :  { %v47_v12 = vpop.permute.xlu0 %46 }
  0x80   :  { %v37_v13 = vpop.permute.xlu1 %36 }
  0x83   :  { %v42_v17 = vpop.permute.xlu0 %41 }
  0x84   :  { %v32_v19 = vpop.permute.xlu1 %31 }
  0x87   :  { %v156_v29 = vpop.permute.xlu0 %155 }
  0xc4   :  { %v263_v14 = vpop.f32.mrf.mxu0 }
  0xc5   :  { %v134_v21 = vadd.f32 %v263_v14, %v37_v13 }
  0xc6   :  { %v128_v15 = vpop.f32.mrf.mxu0 }
  0xc7   :  { %v129_v24 = vadd.f32 %v128_v15, %v32_v19  ;;  %v148_v26 = vmax.f32 %v134_v21, 0.0 }
  0xc8   :  { %v266_v16 = vpop.f32.mrf.mxu0 }
  0xc9   :  { %v144_v18 = vadd.f32 %v266_v16, %v47_v12  ;;  %v147_v27 = vmax.f32 %v129_v24, 0.0 }
  0xca   :  { %v138_v20 = vpop.f32.mrf.mxu0 }
  0xcb   :  { %v150_v22 = vmax.f32 %v144_v18, 0.0  ;;  %v139_v23 = vadd.f32 %v138_v20, %v42_v17 }
  0xcd   :  { %v149_v25 = vmax.f32 %v139_v23, 0.0  ;;  %268 = vmatpush3.msra.mxu1 %v150_v22 }
  0xce   :  { %269 = vmatprep.subr.mxu1 %v288_v11 }
  0xcf   :  { %270 = vmatpush3.msra.mxu1 %v149_v25 }
  0xd0   :  { %271 = vmatprep.subr.mxu1 %v288_v11 }
  0xd1   :  { %272 = vmatpush3.msra.mxu1 %v148_v26 }
  0xd2   :  { %273 = vmatprep.subr.mxu1 %v288_v11 }
  0xd3   :  { %274 = vmatpush3.msra.mxu1 %v147_v27 }
  0xd4   :  { %276 = vmatmul.mubr.msk.f32.vlgmr.msra.gmra.mxu1 %vm158_vm2, %v151_v28 }
 0x194   :  { %v228_v30 = vpop.f32.mrf.mxu1 }
 0x195   :  { %v229_v31 = vadd.f32 %v228_v30, %v156_v29 }
 0x196   :  { %v277_v32 = vpop.f32.mrf.mxu1 }
 0x197   :  { %v248_v33 = vmul.f32 -1.442695, %v229_v31 }
 0x199   :  { %283 = vpow2.f32 %v248_v33 }
 0x1a6   :  { %v284_v34 = vpop.eup %283 }
 0x1a7   :  { %v235_v35 = vadd.f32 1.0, %v284_v34 }
 0x1a9   :  { %285 = vrcp.f32 %v235_v35 }
 0x1b6   :  { %v286_v36 = vpop.eup %285 }
 0x1b7   :  { %238 = vst [vmem:[%s365_s5] sm:$0xff] %v286_v36 }

</bundles_post_ra>
